<compile_context>
chip_gen: v7x
topology: tpu7x:2x2x1
jax: 0.10.0
libtpu: 0.0.40
codegen_flags: <defaults>
</compile_context>

<pallas_src>
import math
import functools

import jax
import jax.numpy as jnp
from jax import lax
from jax.experimental import pallas as pl
from jax.experimental.pallas import tpu as pltpu

_MIB = 2 ** 20


def _round_up(x, m):
    return (x + m - 1) // m * m


def _vmem_budget_bytes():
    """Scoped-VMEM cap with headroom for compiler-internal scratch.

    ~48 MiB on v7x (64 MiB / TensorCore), ~100 MiB on v5e / v6e (128 MiB)."""
    try:
        cap = int(pltpu.get_tpu_info().vmem_capacity_bytes)
    except Exception:
        cap = 64 * _MIB                      # conservative (v7x-sized) fallback
    return max(32 * _MIB, min(cap - 16 * _MIB, 100 * _MIB))


def _pick_tile(total, preferred, align):
    """Largest tile <= preferred that is a multiple of `align`; prefers exact
    divisors of `total` (>= preferred/2) so no padding — and hence no
    post-kernel slice copy over the (M, V) logits — is needed."""
    total_aligned = _round_up(total, align)
    if total_aligned <= preferred:
        return total_aligned
    fallback = (preferred // align) * align
    if total % align == 0:
        t = fallback
        while t >= max(align, fallback // 2):
            if total % t == 0:
                return t
            t -= align
    return fallback


def _mlm_kernel(x_ref, wfc_ref, bfc_ref, gamma_ref, beta_ref, we_ref,
                bias_ref, out_ref, h_ref, *, tm, n_m_inner, n_scratch_tiles):
    """grid = (m_outer ["parallel"], vocab tile, m_inner).

    x_ref:          (tm, F)  input rows (compute dtype)
    wfc_ref:        (F, D)   fc weight (compute dtype)
    bfc/gamma/beta: (1, D)   f32 per-channel params
    we_ref:         (D, tv)  pre-transposed embedding tile (compute dtype)
    bias_ref:       (1, tv)  vocab bias tile (f32)
    out_ref:        (tm, tv) logits tile
    h_ref:          (n_scratch_tiles * tm, D) hidden cache (embedding dtype)
    """
    j = pl.program_id(1)

    if n_scratch_tiles == 1:
        rows = pl.ds(0, tm)
    else:
        m_tile = pl.program_id(0) * n_m_inner + pl.program_id(2)
        rows = pl.ds(pl.multiple_of(m_tile * tm, tm), tm)

    # The hidden state depends only on the M rows: compute it once per M tile
    # (first vocab tile) and reuse it from VMEM for every other vocab tile.
    @pl.when(j == 0)
    def _compute_hidden():
        # Linear (fc): native-dtype MXU operands, f32 accumulation.
        h = jnp.dot(x_ref[...], wfc_ref[...],
                    preferred_element_type=jnp.float32)
        h = h + bfc_ref[...].astype(jnp.float32)
        # Exact erf GELU (matches torch.nn.GELU default).
        inv_sqrt2 = jnp.float32(1.0 / math.sqrt(2.0))
        h = jnp.float32(0.5) * h * (jnp.float32(1.0) + lax.erf(h * inv_sqrt2))
        # LayerNorm (eps = 1e-5, affine).  NOTE: zero-padded rows hit var == 0
        # -> finite rsqrt(eps); they are sliced off in the wrapper, never reuse.
        mean = jnp.mean(h, axis=-1, keepdims=True)
        cen = h - mean
        var = jnp.mean(cen * cen, axis=-1, keepdims=True)
        h = cen * lax.rsqrt(var + jnp.float32(1e-5))
        h = (h * gamma_ref[...].astype(jnp.float32)
             + beta_ref[...].astype(jnp.float32))
        # Single downcast to the embedding dtype: the vocab matmuls read it
        # straight from scratch (no per-vocab-tile cast, half the vld traffic).
        h_ref[rows, :] = h.astype(h_ref.dtype)

    # Vocab projection for this tile: (tm, D) @ (D, tv), f32 accumulation.
    logits = jnp.dot(h_ref[rows, :], we_ref[...],
                     preferred_element_type=jnp.float32)
    logits = logits + bias_ref[...].astype(jnp.float32)
    out_ref[...] = logits.astype(out_ref.dtype)


def prepare_mlm_params(params, word_embeddings, compute_dtype=jnp.bfloat16):
    """One-time parameter packing (call at load time, NOT inside the hot path).

    * Pre-transposes the embedding table to (word_dim, vocab) so the in-kernel
      contraction is on sublanes and the logits stay lane-dense.
    * Casts the two big streamed operands (E^T, fc weight) to `compute_dtype`
      (bf16 recommended: halves the dominant HBM streams, full-rate MXU).
    * Keeps the small per-channel params in f32 (bias / LN applied in f32).
    """
    V, _ = word_embeddings.shape
    return {
        "we_t": jnp.asarray(word_embeddings, compute_dtype).T,    # (D, V)
        "bias": jnp.asarray(params["bias"], jnp.float32).reshape(1, V),
        "fc_w": jnp.asarray(params["fc_w"], compute_dtype),       # (F, D)
        "fc_b": jnp.asarray(params["fc_b"], jnp.float32).reshape(1, -1),
        "ln_w": jnp.asarray(params["ln_w"], jnp.float32).reshape(1, -1),
        "ln_b": jnp.asarray(params["ln_b"], jnp.float32).reshape(1, -1),
    }


@functools.partial(jax.jit, static_argnames=("tile_m", "tile_v", "out_dtype"))
def mlm_layer_forward(x, prepared, *, tile_m=512, tile_v=2048, out_dtype=None):
    """x: [B, L, feat_dim], prepared = prepare_mlm_params(...) -> [B, L, vocab].

    tile_m: rows per M tile (>= 256 on every generation; can be raised toward
      1024 on v5e/v6e where 128 MiB of VMEM is available).
    tile_v: vocab tile width (large multiple of 128: lane-dense stores).
    out_dtype: defaults to the compute/embedding dtype.  bf16 is recommended —
      the (M, V) logits writeback is the largest HBM stream.
    """
    B, L, F = x.shape
    D, V = prepared["we_t"].shape
    M = B * L

    compute_dtype = prepared["we_t"].dtype
    if out_dtype is None:
        out_dtype = compute_dtype
    cb = jnp.dtype(compute_dtype).itemsize
    ob = jnp.dtype(out_dtype).itemsize
    # bf16 packs 16 sublanes per vreg -> align M tiles to 16 rows (8 for f32).
    row_align = 16 if cb == 2 else (32 if cb == 1 else 8)

    budget = _vmem_budget_bytes()

    def est(tm_, tv_, scratch_rows_):            # realistic double-buffered use
        return (2 * tm_ * F * cb                 # x tile
                + 2 * F * D * cb                 # fc weight
                + 6 * D * 4                      # fc bias / ln gamma / ln beta
                + 2 * D * tv_ * cb               # E^T tile
                + 2 * tv_ * 4                    # vocab bias tile
                + 2 * tm_ * tv_ * ob             # logits tile
                + scratch_rows_ * D * cb)        # hidden cache

    tm = _pick_tile(M, tile_m, row_align)
    tv = _pick_tile(V, tile_v, 128)
    # Rarely needed: shrink tiles until the per-M-tile working set fits.
    while est(tm, tv, tm) + 8 * _MIB > budget and tv > 512:
        tv = _pick_tile(V, tv // 2, 128)
    while est(tm, tv, tm) + 8 * _MIB > budget and tm > 2 * row_align:
        tm = _pick_tile(M, tm // 2, row_align)

    m_pad = _round_up(M, tm)
    v_pad = _round_up(V, tv)
    # v7x has two TensorCores: keep >= 2 tiles on the "parallel" M axis when
    # that does not introduce padding.
    if m_pad // tm < 2 and m_pad >= 2 * row_align and (m_pad // 2) % row_align == 0:
        tm = m_pad // 2
    n_m = m_pad // tm
    n_v = v_pad // tv

    # If the hidden state for ALL rows fits in VMEM, iterate vocab-major so
    # each E^T tile is streamed from HBM once per parallel M chunk rather than
    # once per M tile; otherwise fall back to the per-tile hidden cache.
    if n_m > 1 and est(tm, tv, m_pad) + 8 * _MIB <= budget:
        n_m_outer = 2 if n_m % 2 == 0 else 1     # 2 chunks -> both v7x cores
        n_m_inner = n_m // n_m_outer
        n_scratch_tiles = n_m
    else:
        n_m_outer, n_m_inner, n_scratch_tiles = n_m, 1, 1

    x2d = x.reshape(M, F).astype(compute_dtype)
    if m_pad != M:
        x2d = jnp.pad(x2d, ((0, m_pad - M), (0, 0)))

    we_t, bias = prepared["we_t"], prepared["bias"]
    if v_pad != V:
        we_t = jnp.pad(we_t, ((0, 0), (0, v_pad - V)))
        bias = jnp.pad(bias, ((0, 0), (0, v_pad - V)))

    vmem_limit = int(min(budget,
                         max(est(tm, tv, n_scratch_tiles * tm) + 8 * _MIB,
                             32 * _MIB)))

    kernel = functools.partial(_mlm_kernel, tm=tm, n_m_inner=n_m_inner,
                               n_scratch_tiles=n_scratch_tiles)

    out = pl.pallas_call(
        kernel,
        out_shape=jax.ShapeDtypeStruct((m_pad, v_pad), out_dtype),
        grid_spec=pltpu.PrefetchScalarGridSpec(
            num_scalar_prefetch=0,
            grid=(n_m_outer, n_v, n_m_inner),
            in_specs=[
                pl.BlockSpec((tm, F), lambda o, j, i: (o * n_m_inner + i, 0)),
                pl.BlockSpec((F, D), lambda o, j, i: (0, 0)),     # fc weight
                pl.BlockSpec((1, D), lambda o, j, i: (0, 0)),     # fc bias
                pl.BlockSpec((1, D), lambda o, j, i: (0, 0)),     # ln gamma
                pl.BlockSpec((1, D), lambda o, j, i: (0, 0)),     # ln beta
                pl.BlockSpec((D, tv), lambda o, j, i: (0, j)),    # E^T tile
                pl.BlockSpec((1, tv), lambda o, j, i: (0, j)),    # vocab bias
            ],
            out_specs=pl.BlockSpec((tm, tv),
                                   lambda o, j, i: (o * n_m_inner + i, j)),
            scratch_shapes=[pltpu.VMEM((n_scratch_tiles * tm, D),
                                       compute_dtype)],
        ),
        compiler_params=pltpu.CompilerParams(
            dimension_semantics=("parallel", "arbitrary", "arbitrary"),
            vmem_limit_bytes=vmem_limit),
    )(x2d, prepared["fc_w"], prepared["fc_b"], prepared["ln_w"],
      prepared["ln_b"], we_t, bias)

    if m_pad != M or v_pad != V:
        out = out[:M, :V]
    return out.reshape(B, L, V)


def _reference(x, word_embeddings, params):
    """Pure-JAX reference mirroring the PyTorch forward (f32)."""
    h = jnp.einsum("blf,fd->bld", x, params["fc_w"]) + params["fc_b"]
    h = 0.5 * h * (1.0 + lax.erf(h / jnp.sqrt(2.0)))
    mean = jnp.mean(h, axis=-1, keepdims=True)
    var = jnp.mean((h - mean) ** 2, axis=-1, keepdims=True)
    h = (h - mean) / jnp.sqrt(var + 1e-5)
    h = h * params["ln_w"] + params["ln_b"]
    logits = jnp.einsum("bld,vd->blv", h, word_embeddings)
    return logits + params["bias"].reshape(1, 1, -1)


if __name__ == "__main__":
    # Small shapes consistent with MlmLayer.forward.
    B, L = 2, 8                 # batch, sequence
    FEAT = 32                   # feat_emb_dim
    WORD = 32                   # word_emb_dim
    VOCAB = 256                 # vocab_size

    key = jax.random.PRNGKey(0)
    kx, kw, kwfc, kbfc = jax.random.split(key, 4)

    x = jax.random.normal(kx, (B, L, FEAT), dtype=jnp.float32)
    word_embeddings = jax.random.normal(kw, (VOCAB, WORD), jnp.float32) * 0.02

    # Parameter shapes from MlmLayer.__init__ (torch Linear weight is [D, F]).
    bound = 1.0 / math.sqrt(FEAT)
    fc_w_torch = jax.random.uniform(kwfc, (WORD, FEAT), jnp.float32, -bound, bound)
    params = {
        "fc_w": fc_w_torch.T,                                                   # [FEAT, WORD]
        "fc_b": jax.random.uniform(kbfc, (WORD,), jnp.float32, -bound, bound),  # [WORD]
        "ln_w": jnp.ones((WORD,), jnp.float32),
        "ln_b": jnp.zeros((WORD,), jnp.float32),
        "bias": jnp.zeros((VOCAB,), jnp.float32),
    }

    ref = _reference(x, word_embeddings, params)

    # --- f32 path: exact parity with the PyTorch/JAX reference. -------------
    prepared_f32 = prepare_mlm_params(params, word_embeddings, jnp.float32)
    logits = mlm_layer_forward(x, prepared_f32)
    jax.block_until_ready(logits)
    assert logits.shape == (B, L, VOCAB)
    assert logits.dtype == jnp.float32
    assert jnp.allclose(logits, ref, atol=1e-4, rtol=1e-4)

    # --- bf16 path: recommended fast path (bf16 E^T / fc weight / logits). --
    prepared_bf16 = prepare_mlm_params(params, word_embeddings, jnp.bfloat16)
    logits_bf16 = mlm_layer_forward(x, prepared_bf16)
    jax.block_until_ready(logits_bf16)
    assert logits_bf16.shape == (B, L, VOCAB)
    assert logits_bf16.dtype == jnp.bfloat16
    assert jnp.allclose(logits_bf16.astype(jnp.float32), ref,
                        atol=5e-2, rtol=5e-2)

    print("KERNEL_OK")
</pallas_src>

<mosaic_0001>
module attributes {stable_mosaic.version = 11 : i64} {
  func.func @_mlm_kernel(%arg0: i32, %arg1: i32, %arg2: i32, %arg3: memref<8x32xf32, #tpu.memory_space<vmem>>, %arg4: memref<32x32xf32, #tpu.memory_space<vmem>>, %arg5: memref<1x32xf32, #tpu.memory_space<vmem>>, %arg6: memref<1x32xf32, #tpu.memory_space<vmem>>, %arg7: memref<1x32xf32, #tpu.memory_space<vmem>>, %arg8: memref<32x256xf32, #tpu.memory_space<vmem>>, %arg9: memref<1x256xf32, #tpu.memory_space<vmem>>, %arg10: memref<8x256xf32, #tpu.memory_space<vmem>>, %arg11: memref<16x32xf32, #tpu.memory_space<vmem>>) attributes {dimension_semantics = [#tpu.dimension_semantics<parallel>, #tpu.dimension_semantics<arbitrary>, #tpu.dimension_semantics<arbitrary>], iteration_bounds = array<i64: 2, 1, 1>, scalar_prefetch = 0 : i64, scratch_operands = 1 : i64, tpu.core_type = #tpu.core_type<tc>, window_params = [{transform_indices = @transform_0, window_bounds = array<i64: 8, 32>}, {pipeline_mode = #tpu.pipeline_mode<synchronous>, transform_indices = @transform_1, window_bounds = array<i64: 32, 32>}, {pipeline_mode = #tpu.pipeline_mode<synchronous>, transform_indices = @transform_2, window_bounds = array<i64: 1, 32>}, {pipeline_mode = #tpu.pipeline_mode<synchronous>, transform_indices = @transform_3, window_bounds = array<i64: 1, 32>}, {pipeline_mode = #tpu.pipeline_mode<synchronous>, transform_indices = @transform_4, window_bounds = array<i64: 1, 32>}, {transform_indices = @transform_5, window_bounds = array<i64: 32, 256>}, {transform_indices = @transform_6, window_bounds = array<i64: 1, 256>}, {transform_indices = @transform_7, window_bounds = array<i64: 8, 256>}]} {
    %c1_i32 = arith.constant 1 : i32
    %0 = arith.muli %arg0, %c1_i32 : i32
    %1 = arith.addi %0, %arg2 : i32
    %c8_i32 = arith.constant 8 : i32
    %2 = arith.muli %1, %c8_i32 : i32
    %3 = tpu.assume_multiple %2, 8 : i32
    %c0_i32 = arith.constant 0 : i32
    %4 = arith.cmpi eq, %arg1, %c0_i32 : i32
    %5 = arith.extui %4 : i1 to i32
    %c0_i32_0 = arith.constant 0 : i32
    %6 = arith.cmpi ne, %5, %c0_i32_0 : i32
    scf.if %6 {
      %c0_7 = arith.constant 0 : index
      %c0_8 = arith.constant 0 : index
      %15 = vector.load %arg3[%c0_7, %c0_8] : memref<8x32xf32, #tpu.memory_space<vmem>>, vector<8x32xf32>
      %c0_9 = arith.constant 0 : index
      %c0_10 = arith.constant 0 : index
      %16 = vector.load %arg4[%c0_9, %c0_10] : memref<32x32xf32, #tpu.memory_space<vmem>>, vector<32x32xf32>
      %cst_11 = arith.constant dense<0.000000e+00> : vector<8x32xf32>
      %17 = tpu.matmul %15, %16, %cst_11 {dimension_numbers = #tpu.dot_dimension_numbers<[1], [0], [0], [1], [0, 0, 1, 1], [], []>} : vector<8x32xf32>, vector<32x32xf32>, vector<8x32xf32> -> vector<8x32xf32>
      %c0_12 = arith.constant 0 : index
      %c0_13 = arith.constant 0 : index
      %18 = vector.load %arg5[%c0_12, %c0_13] : memref<1x32xf32, #tpu.memory_space<vmem>>, vector<1x32xf32>
      %19 = vector.broadcast %18 : vector<1x32xf32> to vector<8x32xf32>
      %20 = arith.addf %17, %19 : vector<8x32xf32>
      %cst_14 = arith.constant 5.000000e-01 : f32
      %21 = vector.broadcast %cst_14 : f32 to vector<8x32xf32>
      %22 = arith.mulf %21, %20 : vector<8x32xf32>
      %cst_15 = arith.constant 0.707106769 : f32
      %23 = vector.broadcast %cst_15 : f32 to vector<8x32xf32>
      %24 = arith.mulf %20, %23 : vector<8x32xf32>
      %25 = math.erf %24 : vector<8x32xf32>
      %cst_16 = arith.constant 1.000000e+00 : f32
      %26 = vector.broadcast %cst_16 : f32 to vector<8x32xf32>
      %27 = arith.addf %26, %25 : vector<8x32xf32>
      %28 = arith.mulf %22, %27 : vector<8x32xf32>
      %cst_17 = arith.constant dense<0.000000e+00> : vector<8xf32>
      %29 = vector.multi_reduction <add>, %28, %cst_17 [1] : vector<8x32xf32> to vector<8xf32>
      %30 = vector.shape_cast %29 : vector<8xf32> to vector<8x1xf32>
      %cst_18 = arith.constant 3.200000e+01 : f32
      %31 = vector.broadcast %cst_18 : f32 to vector<8x1xf32>
      %32 = arith.divf %30, %31 : vector<8x1xf32>
      %33 = vector.broadcast %32 : vector<8x1xf32> to vector<8x32xf32>
      %34 = arith.subf %28, %33 : vector<8x32xf32>
      %35 = arith.mulf %34, %34 : vector<8x32xf32>
      %cst_19 = arith.constant dense<0.000000e+00> : vector<8xf32>
      %36 = vector.multi_reduction <add>, %35, %cst_19 [1] : vector<8x32xf32> to vector<8xf32>
      %37 = vector.shape_cast %36 : vector<8xf32> to vector<8x1xf32>
      %cst_20 = arith.constant 3.200000e+01 : f32
      %38 = vector.broadcast %cst_20 : f32 to vector<8x1xf32>
      %39 = arith.divf %37, %38 : vector<8x1xf32>
      %cst_21 = arith.constant 9.99999974E-6 : f32
      %40 = vector.broadcast %cst_21 : f32 to vector<8x1xf32>
      %41 = arith.addf %39, %40 : vector<8x1xf32>
      %42 = math.rsqrt %41 : vector<8x1xf32>
      %43 = vector.broadcast %42 : vector<8x1xf32> to vector<8x32xf32>
      %44 = arith.mulf %34, %43 : vector<8x32xf32>
      %c0_22 = arith.constant 0 : index
      %c0_23 = arith.constant 0 : index
      %45 = vector.load %arg6[%c0_22, %c0_23] : memref<1x32xf32, #tpu.memory_space<vmem>>, vector<1x32xf32>
      %46 = vector.broadcast %45 : vector<1x32xf32> to vector<8x32xf32>
      %47 = arith.mulf %44, %46 : vector<8x32xf32>
      %c0_24 = arith.constant 0 : index
      %c0_25 = arith.constant 0 : index
      %48 = vector.load %arg7[%c0_24, %c0_25] : memref<1x32xf32, #tpu.memory_space<vmem>>, vector<1x32xf32>
      %49 = vector.broadcast %48 : vector<1x32xf32> to vector<8x32xf32>
      %50 = arith.addf %47, %49 : vector<8x32xf32>
      %51 = arith.index_cast %3 : i32 to index
      %c0_26 = arith.constant 0 : index
      %52 = vector.load %arg11[%51, %c0_26] : memref<16x32xf32, #tpu.memory_space<vmem>>, vector<8x32xf32>
      tpu.vector_store %arg11[%51, %c0_26], %50 {strides = array<i32>} : memref<16x32xf32, #tpu.memory_space<vmem>>, vector<8x32xf32>,
    } else {
    }
    %7 = arith.index_cast %3 : i32 to index
    %c0 = arith.constant 0 : index
    %8 = vector.load %arg11[%7, %c0] : memref<16x32xf32, #tpu.memory_space<vmem>>, vector<8x32xf32>
    %c0_1 = arith.constant 0 : index
    %c0_2 = arith.constant 0 : index
    %9 = vector.load %arg8[%c0_1, %c0_2] : memref<32x256xf32, #tpu.memory_space<vmem>>, vector<32x256xf32>
    %cst = arith.constant dense<0.000000e+00> : vector<8x256xf32>
    %10 = tpu.matmul %8, %9, %cst {dimension_numbers = #tpu.dot_dimension_numbers<[1], [0], [0], [1], [0, 0, 1, 1], [], []>} : vector<8x32xf32>, vector<32x256xf32>, vector<8x256xf32> -> vector<8x256xf32>
    %c0_3 = arith.constant 0 : index
    %c0_4 = arith.constant 0 : index
    %11 = vector.load %arg9[%c0_3, %c0_4] : memref<1x256xf32, #tpu.memory_space<vmem>>, vector<1x256xf32>
    %12 = vector.broadcast %11 : vector<1x256xf32> to vector<8x256xf32>
    %13 = arith.addf %10, %12 : vector<8x256xf32>
    %c0_5 = arith.constant 0 : index
    %c0_6 = arith.constant 0 : index
    %14 = vector.load %arg10[%c0_5, %c0_6] : memref<8x256xf32, #tpu.memory_space<vmem>>, vector<8x256xf32>
    tpu.vector_store %arg10[%c0_5, %c0_6], %13 {strides = array<i32>} : memref<8x256xf32, #tpu.memory_space<vmem>>, vector<8x256xf32>,
    return
  }
  func.func @transform_0(%arg0: i32, %arg1: i32, %arg2: i32) -> (i32, i32) {
    %c1_i32 = arith.constant 1 : i32
    %0 = arith.muli %arg0, %c1_i32 : i32
    %1 = arith.addi %0, %arg2 : i32
    %c0_i32 = arith.constant 0 : i32
    %c0_i32_0 = arith.constant 0 : i32
    return %1, %c0_i32 : i32, i32
  }
  func.func @transform_1(%arg0: i32, %arg1: i32, %arg2: i32) -> (i32, i32) {
    %c0_i32 = arith.constant 0 : i32
    %c0_i32_0 = arith.constant 0 : i32
    %c0_i32_1 = arith.constant 0 : i32
    return %c0_i32, %c0_i32_0 : i32, i32
  }
  func.func @transform_2(%arg0: i32, %arg1: i32, %arg2: i32) -> (i32, i32) {
    %c0_i32 = arith.constant 0 : i32
    %c0_i32_0 = arith.constant 0 : i32
    %c0_i32_1 = arith.constant 0 : i32
    return %c0_i32, %c0_i32_0 : i32, i32
  }
  func.func @transform_3(%arg0: i32, %arg1: i32, %arg2: i32) -> (i32, i32) {
    %c0_i32 = arith.constant 0 : i32
    %c0_i32_0 = arith.constant 0 : i32
    %c0_i32_1 = arith.constant 0 : i32
    return %c0_i32, %c0_i32_0 : i32, i32
  }
  func.func @transform_4(%arg0: i32, %arg1: i32, %arg2: i32) -> (i32, i32) {
    %c0_i32 = arith.constant 0 : i32
    %c0_i32_0 = arith.constant 0 : i32
    %c0_i32_1 = arith.constant 0 : i32
    return %c0_i32, %c0_i32_0 : i32, i32
  }
  func.func @transform_5(%arg0: i32, %arg1: i32, %arg2: i32) -> (i32, i32) {
    %c0_i32 = arith.constant 0 : i32
    %c0_i32_0 = arith.constant 0 : i32
    return %c0_i32, %arg1 : i32, i32
  }
  func.func @transform_6(%arg0: i32, %arg1: i32, %arg2: i32) -> (i32, i32) {
    %c0_i32 = arith.constant 0 : i32
    %c0_i32_0 = arith.constant 0 : i32
    return %c0_i32, %arg1 : i32, i32
  }
  func.func @transform_7(%arg0: i32, %arg1: i32, %arg2: i32) -> (i32, i32) {
    %c1_i32 = arith.constant 1 : i32
    %0 = arith.muli %arg0, %c1_i32 : i32
    %1 = arith.addi %0, %arg2 : i32
    %c0_i32 = arith.constant 0 : i32
    return %1, %arg1 : i32, i32
  }
}

</mosaic_0001>

<bundles_post_ra>
// kernel: mlm_layer_forward.1
= control target key start
LH: loop header
LB: loop body
LE: loop exit
PB: predicated region body
PF: predicated region fallthrough
CT: control target
= control target key end

     0   :  { %12 = vsyncpa [#allocation4], 0  ;;  %s1395_s0 = inlined_call_operand.hbm [shape: f32[16,32], index: 0, kind: input, shape index: {}]   ;;  %s1396_s1 = inlined_call_operand.hbm [shape: f32[32,32], index: 1, kind: input, shape index: {}]   ;;  %s1397_s2 = inlined_call_operand.vmem [shape: f32[1,32], index: 2, kind: input, shape index: {}]   ;;  %s1398_s3 = inlined_call_operand.vmem [shape: f32[1,32], index: 3, kind: input, shape index: {}]   ;;  %s1399_s4 = inlined_call_operand.vmem [shape: f32[1,32], index: 4, kind: input, shape index: {}]   ;;  %s1400_s5 = inlined_call_operand.hbm [shape: f32[32,256], index: 5, kind: input, shape index: {}]   ;;  %s1401_s6 = inlined_call_operand.vmem [shape: f32[1,256], index: 6, kind: input, shape index: {}]   ;;  %s1402_s7 = inlined_call_operand.hbm [shape: f32[16,256], index: 7, kind: output, shape index: {}]  }
   0x1   :  { %14 = vsyncpa [#allocation4 + $0x1], 0 }
   0x2   :  { %15 = vsyncpa [#allocation7], 0 }
   0x3   :  { %16 = vsyncpa [#allocation5], 0 }
   0x4   :  { %18 = vsyncpa [#allocation5 + $0x1], 0  ;;  %s1126_s24 = smov 0   ;;  %s1128_s25 = smov 0  }
   0x5   :  { %s1130_s26 = smov 0   ;;  %s1132_s27 = smov 0  }
   0x6   :  { %s1134_s28 = smov 0   ;;  %s1136_s29 = smov 0  }
   0x7 LB: > { %1409 = sst [smem:[#allocation13_spill]] %s1053_s24  ;;  %s751_s30 = sadd.s32 4294967295, %s1073_s29   ;;  %s1073_s29 = sphi %s1136_s29, %s24_s29   ;;  %s1069_s28 = sphi %s1134_s28, %s1430_s28   ;;  %s1065_s27 = sphi %s1132_s27, %s1429_s27   ;;  %s1061_s26 = sphi %s1130_s26, %s1428_s26   ;;  %s1057_s25 = sphi %s1128_s25, %s1427_s25   ;;  %s1053_s24 = sphi %s1126_s24, %s1426_s24  }
   0x8   : > { %s752_s8 = sadd.s32 4294967294, %s1073_s29   ;;  %p65_p0 = scmp.ne.s32.totalorder %s1057_s25, %s1053_s24 }
   0x9   : > { %p1160_p1 = scmp.eq.s32.totalorder %s751_s30, 0  ;;  %p1164_p2 = scmp.eq.s32.totalorder %s751_s30, 1 }
   0xa   : > { %p235_p3 = scmp.eq.s32.totalorder %s752_s8, 1  ;;  %p753_p5 = scmp.ge.s32.totalorder %s1073_s29, 1 }
   0xb   : > { %s1410_s9 = scalar_select %p1160_p1, 1, 0 }
   0xc   : > { %p1170_p4 = por %p1160_p1, %p65_p0  ;;  %p1175_p6 = por %p235_p3, %p65_p0 }
   0xd   : > { %p242_p7 = scmp.lt.s32.totalorder %s1073_s29, 3  ;;  %s1075_s14 = smov [#allocation6]  }
   0xe   : > { %s1412_s11 = scalar_select %p1170_p4, 1, 0 }
   0xf   : > { %s1413_s12 = scalar_select %p1175_p6, 1, 0 }
  0x10   : > { %p1180_p8 = pnand %p753_p5, %p242_p7  ;;  %s254_s15 = sshll.u32 %s1075_s14, 4  ;;  %s1184_s15 = int_to_ptr.vmem [resolvable:$true] %s254_s15 }
  0x11   : > { %1414 = sst [smem:[#allocation14_spill]] %s1413_s12  ;;  %s1076_s17 = smov [#allocation8]  }
  0x12   : > { %p819_p9 = pneg %p1180_p8  ;;  %s279_s18 = sshll.u32 %s1076_s17, 4  ;;  %s1195_s18 = int_to_ptr.vmem [resolvable:$true] %s279_s18 }
  0x13   : > { %s901_s21 = scalar_lea.hbm %s1396_s1, 512 }
  0x14   : > { %p1191_p11 = pnand %p819_p9, %p1160_p1  ;;  %p902_p12 = scmp.ne.s32.totalorder %s1396_s1, %s901_s21 }
  0x15   : > { %p908_p5 = scmp.lt.u32.totalorder %s901_s21, %s1396_s1 }
  0x16   : > { %p903_p13 = pneg %p1191_p11 }
  0x18   : > { %p904_p0 = pnand %p903_p13, %p902_p12 }
  0x1a   : > { %p905_p3 = pneg %p904_p0 }
  0x1c   : > { %p910_p7 = pnand %p908_p5, %p905_p3 }
  0x1e   : > { %913 = shalt.err (!%p910_p7)
}
  0x1f   : > { %s914_s14 = scalar_lea.vmem %s1184_s15, 512  ;;  %p922_p1 = scmp.lt.s32.totalorder %s1184_s15, %s1184_s15 }
  0x20   : > { %p915_p9 = scmp.ne.s32.totalorder %s1184_s15, %s914_s14  ;;  %p923_p12 = scmp.lt.s32.totalorder %s914_s14, %s914_s14 }
  0x22   : > { %p917_p10 = pnand %p915_p9, %p903_p13  ;;  %p924_p0 = por %p923_p12, %p922_p1 }
  0x24   : > { %p918_p6 = pneg %p917_p10 }
  0x26   : > { %p925_p4 = pnand %p924_p0, %p918_p6 }
  0x28   : > { %928 = shalt.err (!%p925_p4)
}
  0x29   : > { %s1077_s17 = smov 128   ;;  %s1078_s19 = smov 8  }
  0x2a   : > { %822 = dma.hbm_to_vmem [thread:$0]  (!%p1191_p11), %s1396_s1, 512, %s1184_s15, [#allocation7], %s1077_s17, %s1077_s17, %s1078_s19  }
  0x2b   : > { %s929_s30 = scalar_lea.hbm %s1400_s5, 1024 }
  0x2c   : > { %p930_p1 = scmp.ne.s32.totalorder %s1400_s5, %s929_s30  ;;  %p936_p10 = scmp.lt.u32.totalorder %s929_s30, %s1400_s5 }
  0x2e   : > { %p932_p4 = pnand %p930_p1, %p903_p13 }
  0x30   : > { %p933_p6 = pneg %p932_p4 }
  0x32   : > { %p938_p3 = pnand %p936_p10, %p933_p6 }
  0x34   : > { %941 = shalt.err (!%p938_p3)
}
  0x35   : > { %s942_s15 = scalar_lea.vmem %s1195_s18, 1024  ;;  %p950_p12 = scmp.lt.s32.totalorder %s1195_s18, %s1195_s18 }
  0x36   : > { %p943_p5 = scmp.ne.s32.totalorder %s1195_s18, %s942_s15  ;;  %p951_p0 = scmp.lt.s32.totalorder %s942_s15, %s942_s15 }
  0x38   : > { %p945_p7 = pnand %p943_p5, %p903_p13  ;;  %p952_p1 = por %p951_p0, %p950_p12 }
  0x3a   : > { %p946_p9 = pneg %p945_p7 }
  0x3c   : > { %p953_p4 = pnand %p952_p1, %p946_p9 }
  0x3e   : > { %956 = shalt.err (!%p953_p4)
}
  0x3f   : > { %s1079_s24 = smov 256   ;;  %s1080_s12 = smov 16  }
  0x40   : > { %825 = dma.hbm_to_vmem [thread:$0]  (!%p1191_p11), %s1400_s5, 1024, %s1195_s18, [#allocation7], %s1079_s24, %s1079_s24, %s1080_s12  }
  0x41   : > { %s43_s20 = sadd.s32 1, %s1069_s28  ;;  %s52_s21 = sadd.s32 1, %s1061_s26 }
  0x42   : > { %p45_p13 = scmp.ge.s32.totalorder %s43_s20, 2  ;;  %p59_p6 = scmp.ne.s32.totalorder %s1061_s26, %s1057_s25 }
  0x43   : > { %p60_p10 = scmp.eq.s32.totalorder %s1073_s29, 0  ;;  %p836_p3 = scmp.lt.s32.totalorder %s1073_s29, 2 }
  0x44   : > { %s1432_s20 = smov (%p45_p13, %s43_s20), 0  ;;  %p1259_p7 = por %p1164_p2, %p59_p6 }
  0x45   : > { %p61_p5 = por %p60_p10, %p59_p6  ;;  %s49_s16 = ssub.s32 %s1069_s28, %s1432_s20 }
  0x46   : > { %s1417_s22 = scalar_select %p1259_p7, 1, 0 }
  0x47   : > { %s301_s23 = sand.u32 1, %s1061_s26   ;;  %p50_p9 = scmp.eq.s32.totalorder %s49_s16, 0 }
  0x48   : > { %s758_s18 = sshll.u32 %s301_s23, 3  ;;  %s759_s30 = sshll.u32 %s1069_s28, 7 }
  0x49   : > { %s1268_s8 = scalar_select %p50_p9, %s1061_s26, %s52_s21  }
  0x4a   : > { %s1273_s24 = scalar_lea.hbm %s1395_s0, %s759_s30  ;;  %s305_s10 = scalar_lea.vmem [#allocation3], %s758_s18 }
  0x4b   : > { %s313_s12 = sshll.u32 %s305_s10, 4  ;;  %p1277_p2 = pnand %p836_p3, %p61_p5  ;;  %s1281_s12 = int_to_ptr.vmem [resolvable:$true] %s313_s12 }
  0x4c   : > { %s302_s19 = scalar_lea.sflag [#allocation4], %s301_s23  ;;  %s957_s21 = scalar_lea.hbm %s1273_s24, 128 }
  0x4d   : > { %p958_p11 = scmp.ne.s32.totalorder %s1273_s24, %s957_s21  ;;  %p959_p12 = pneg %p1277_p2 }
  0x4e   : > { %s962_s30 = scalar_lea.hbm %s1395_s0, 256  ;;  %p963_p4 = scmp.lt.u32.totalorder %s1273_s24, %s1395_s0 }
  0x4f   : > { %p960_p0 = pnand %p959_p12, %p958_p11  ;;  %p964_p13 = scmp.lt.u32.totalorder %s962_s30, %s957_s21 }
  0x50   : > { %p966_p10 = scmp.lt.u32.totalorder %s957_s21, %s1273_s24 }
  0x51   : > { %p961_p1 = pneg %p960_p0  ;;  %p965_p6 = por %p964_p13, %p963_p4 }
  0x53   : > { %p967_p3 = por %p966_p10, %p965_p6 }
  0x55   : > { %p968_p5 = pnand %p967_p3, %p961_p1 }
  0x57   : > { %971 = shalt.err (!%p968_p5)
}
  0x58   : > { %s972_s23 = scalar_lea.vmem %s1281_s12, 128  ;;  %s1081_s10 = smov [#allocation3]  }
  0x59   : > { %p973_p9 = scmp.ne.s32.totalorder %s1281_s12, %s972_s23  ;;  %s977_s16 = sshll.u32 %s1081_s10, 4  ;;  %s978_s16 = int_to_ptr.vmem [resolvable:$false] %s977_s16 }
  0x5a   : > { %s979_s18 = scalar_lea.vmem %s978_s16, 256  ;;  %p980_p7 = scmp.lt.s32.totalorder %s1281_s12, %s978_s16 }
  0x5b   : > { %p975_p11 = pnand %p973_p9, %p959_p12  ;;  %p981_p4 = scmp.lt.s32.totalorder %s979_s18, %s972_s23 }
  0x5d   : > { %p976_p0 = pneg %p975_p11  ;;  %p982_p13 = por %p981_p4, %p980_p7 }
  0x5f   : > { %p983_p6 = pnand %p982_p13, %p976_p0 }
  0x61   : > { %986 = shalt.err (!%p983_p6)
}
  0x62   : > { %829 = dma.hbm_to_vmem [thread:$0]  (!%p1277_p2), %s1273_s24, 128, %s1281_s12, %s302_s19  }
  0x63   : > { %322 = sbr.rel (%p1180_p8) target bundleno = 902 (0x386), region = 48  ;;  %s1311_s21 = sand.u32 (!%p1180_p8), 1, %s1057_s25  }
  0x64   : > { %s761_s30 = sshll.u32 (!%p1180_p8), %s1311_s21, 3  ;;  %s325_s14 = scalar_lea.sflag (!%p1180_p8), [#allocation4], %s1311_s21 }
  0x65   : > { %s328_s15 = scalar_lea.vmem (!%p1180_p8), [#allocation3], %s761_s30  ;;  %p1419_p7 = scmp.ne.s32.totalorder (!%p1180_p8), %s1412_s11, 0 }
  0x6a   : > { %1040 = dma.done.wait (%p1419_p7), %s325_s14, 128  }
  0x6b   : > { %1042 = vsyncadd (%p1419_p7), %s325_s14, 4294967168  ;;  %p1420_p12 = scmp.ne.s32.totalorder %s1410_s9, 0 }
  0x6d   : > { %1044 = dma.done.wait (%p1420_p12), [#allocation7], 1536  }
  0x6e   : > { %1046 = vsyncadd (%p1420_p12), [#allocation7], 4294965760  ;;  %v1082_v0 = vmov 0.0|0.0   ;;  %vm1083_vm0 = vmmov 0   ;;  %v1084_v1 = vmov 0.0   ;;  %v387_v2 = vld [vmem:[#allocation6] sm:$0xff]  ;;  %v521_v46 = vlaneseq }
  0x6f   : > { %793 = vmatprep.subr.bf16.mxu0 %v1082_v0  ;;  %790 = vmatprep.mubr.msk.f32.mxu0 %vm1083_vm0, %v1084_v1  ;;  %v388_v3 = vld [vmem:[#allocation6 + $0x8] sm:$0xff]  ;;  %v389_v4 = vld [vmem:[#allocation6 + $0x10] sm:$0xff]  ;;  %v390_v6 = vld [vmem:[#allocation6 + $0x18] sm:$0xff]  ;;  %vm398_vm1 = vcmask 261120   ;;  %s765_s12 = sshll.u32 %s1065_s27, 3  ;;  %s764_s10 = sshll.u32 %s1311_s21, 4 }
  0x70   : > { %599 = vmatprep.mubr.f32.mxu1 %v1084_v1  ;;  %v794_v5 = vpack.c.bf16 %v388_v3, %v387_v2  ;;  %v797_v7 = vpack.c.bf16 %v390_v6, %v389_v4  ;;  %v386_v8 = vld [vmem:[%s328_s15] sm:$0xff]  ;;  %v766_v9 = vld [vmem:[%s1397_s2] ss:$0 sm:$0xff]  ;;  %v512_v24 = vld [vmem:[#allocation8 + $0x8] sm:$0xff]  ;;  %s507_s23 = scalar_lea.vmem [#allocation2], %s765_s12  ;;  %v522_v47 = vshrl.u32 %v521_v46, 7 }
  0x71   : > { %v514_v25 = vld [vmem:[#allocation8 + $0x18] sm:$0xff]  ;;  %v511_v27 = vld [vmem:[#allocation8] sm:$0xff]  ;;  %v513_v28 = vld [vmem:[#allocation8 + $0x10] sm:$0xff]  ;;  %s776_s30 = sshll.u32 %s1065_s27, 8  ;;  %s370_s14 = scalar_lea.vmem [#allocation9], %s764_s10 }
  0x72   : > { %795 = vmatpush3.bf16.msra.mxu0 %v794_v5  ;;  %v799_v26 = vpack.c.bf16 %v514_v25, %v512_v24  ;;  %v516_v29 = vld [vmem:[#allocation8 + $0x28] sm:$0xff]  ;;  %v801_v30 = vpack.c.bf16 %v513_v28, %v511_v27  ;;  %v518_v31 = vld [vmem:[#allocation8 + $0x38] sm:$0xff]  ;;  %v515_v32 = vld [vmem:[#allocation8 + $0x20] sm:$0xff]  ;;  %v523_v48 = vsub.s32 0, %v522_v47  ;;  %v527_v50 = vsub.s32 1, %v522_v47  ;;  %s626_s15 = sshll.u32 %s370_s14, 4  ;;  %s1346_s13 = scalar_lea.hbm %s1402_s7, %s776_s30  ;;  %s1348_s15 = int_to_ptr.vmem [resolvable:$true] %s626_s15 }
  0x73   : > { %796 = vmatprep.subr.bf16.mxu0 %v1082_v0  ;;  %v517_v33 = vld [vmem:[#allocation8 + $0x30] sm:$0xff]  ;;  %v803_v34 = vpack.c.bf16 %v518_v31, %v516_v29  ;;  %v768_v40 = vld [vmem:[%s1398_s3] ss:$0 sm:$0xff]  ;;  %s609_s24 = scalar_lea.sflag [#allocation5], %s1311_s21  ;;  %s987_s27 = scalar_lea.vmem %s1348_s15, 256 }
  0x74   : > { %800 = vmatprep.subr.bf16.mxu1 %v799_v26  ;;  %v805_v35 = vpack.c.bf16 %v517_v33, %v515_v32  ;;  %v769_v42 = vld [vmem:[%s1399_s4] ss:$0 sm:$0xff]  ;;  %p988_p8 = scmp.ne.s32.totalorder %s1348_s15, %s987_s27  ;;  %p1421_p2 = scmp.ne.s32.totalorder %s1417_s22, 0 }
  0x75   : > { %802 = vmatpush1.bf16.msra.mxu1 %v801_v30  ;;  %v519_v49 = vld [vmem:[%s1401_s6] sm:$0x3]  ;;  %s1085_s12 = smov [#allocation9]  }
  0x76   : > { %798 = vmatpush3.bf16.msra.mxu0 %v797_v7  ;;  %804 = vmatprep.subr.bf16.mxu1 %v803_v34  ;;  %v524_v51 = vrot.slane %v519_v49, %v523_v48  ;;  %v528_v52 = vrot.slane %v519_v49, %v527_v50  ;;  %p989_p1 = pnand %p988_p8, %p1421_p2  ;;  %s991_s17 = sshll.u32 %s1085_s12, 4  ;;  %s992_s17 = int_to_ptr.vmem [resolvable:$false] %s991_s17 }
  0x77   : > { %s993_s19 = scalar_lea.vmem %s992_s17, 512  ;;  %p994_p3 = scmp.lt.s32.totalorder %s1348_s15, %s992_s17 }
  0x78   : > { %p990_p10 = pneg %p989_p1  ;;  %p995_p5 = scmp.lt.s32.totalorder %s993_s19, %s987_s27 }
  0x79   : > { %791 = vmatmul.mubr.msk.f32.vlgmr.msra.gmra.mrb[0].mxu0 %vm398_vm1, %v386_v8  ;;  %806 = vmatpush1.bf16.msra.mxu1 %v805_v35 }
  0x7a   : > { %p996_p9 = por %p995_p5, %p994_p3 }
  0x7c   : > { %p997_p11 = pnand %p996_p9, %p990_p10 }
 0x14c   : > { %v468_v10 = vpop.f32.mrb[0].mxu0 }
 0x14d   : > { %v469_v11 = vadd.f32 %v766_v9, %v468_v10  ;;  %v792_v12 = vpop.f32.mrb[1].mxu0 }
 0x14f   : > { %v473_v13 = vmul.f32 0.70710677, %v469_v11  ;;  %v472_v15 = vmul.f32 0.5, %v469_v11 }
 0x151   : > { %897 = verf.f32 %v473_v13 }
 0x15b   : > { %v898_v14 = vpop.eup %897 }
 0x15c   : > { %v475_v16 = vadd.f32 1.0, %v898_v14 }
 0x15e   : > { %v476_v17 = vmul.f32 %v475_v16, %v472_v15 }
 0x160   : > { %v477_v18 = vsel %vm398_vm1, %v476_v17, 0.0 }
 0x161   : > { %478 = vadd.xlane.f32.xlu0 %v477_v18 }
 0x1ee   : > { %v479_v19 = vpop.xlane.xlu0 %478 }
 0x1ef   : > { %v481_v20 = vmul.f32 0.03125, %v479_v19 }
 0x1f1   : > { %v482_v21 = vsub.f32 %v476_v17, %v481_v20 }
 0x1f3   : > { %v483_v22 = vmul.f32 %v482_v21, %v482_v21 }
 0x1f5   : > { %v484_v23 = vsel %vm398_vm1, %v483_v22, 0.0 }
 0x1f6   : > { %485 = vadd.xlane.f32.xlu0 %v484_v23 }
 0x283   : > { %v486_v36 = vpop.xlane.xlu0 %485 }
 0x284   : > { %v487_v37 = vmul.f32 0.03125, %v486_v36 }
 0x286   : > { %v488_v38 = vadd.f32 1e-05, %v487_v37 }
 0x288   : > { %899 = vrsqrt.f32 %v488_v38 }
 0x292   : > { %v900_v39 = vpop.eup %899 }
 0x293   : > { %v490_v41 = vmul.f32 %v900_v39, %v482_v21 }
 0x295   : > { %v498_v43 = vmul.f32 %v768_v40, %v490_v41 }
 0x297   : > { %v506_v44 = vadd.f32 %v769_v42, %v498_v43 }
 0x299   : > { %508 = vst.msk [vmem:[%s507_s23] sm:$0xff] %vm398_vm1, %v506_v44 }
 0x2a0   : > { %v510_v45 = vld [vmem:[%s507_s23] sm:$0xff] }
 0x2a1   : > { %770 = vmatmul.mubr.msk.f32.vlgmr.msra.gmra.mrb[0].mxu1 %vm398_vm1, %v510_v45 }
 0x374   : > { %v601_v53 = vpop.f32.mrb[0].mxu1 }
 0x375   : > { %v602_v54 = vadd.f32 %v601_v53, %v524_v51  ;;  %v603_v55 = vpop.f32.mrb[1].mxu1 }
 0x376   : > { %v604_v56 = vadd.f32 %v603_v55, %v528_v52 }
 0x377   : > { %606 = vst [vmem:[%s370_s14] sm:$0xff] %v602_v54 }
 0x378   : > { %607 = vst [vmem:[%s370_s14 + $0x8] sm:$0xff] %v604_v56 }
 0x379   : > { %1000 = shalt.err (!%p997_p11)
}
 0x37a   : > { %s1001_s21 = scalar_lea.hbm %s1346_s13, 256  ;;  %s1005_s16 = scalar_lea.hbm %s1402_s7, 512 }
 0x37b   : > { %p1002_p0 = scmp.ne.s32.totalorder %s1346_s13, %s1001_s21  ;;  %p1006_p6 = scmp.lt.u32.totalorder %s1346_s13, %s1402_s7 }
 0x37c   : > { %p1007_p7 = scmp.lt.u32.totalorder %s1005_s16, %s1001_s21  ;;  %p1009_p8 = scmp.lt.u32.totalorder %s1001_s21, %s1346_s13 }
 0x37d   : > { %p1003_p4 = pnand %p1002_p0, %p1421_p2 }
 0x37e   : > { %p1008_p12 = por %p1007_p7, %p1006_p6 }
 0x37f   : > { %p1004_p13 = pneg %p1003_p4 }
 0x380   : > { %p1010_p1 = por %p1009_p8, %p1008_p12 }
 0x382   : > { %p1011_p10 = pnand %p1010_p1, %p1004_p13 }
 0x384   : > { %1014 = shalt.err (!%p1011_p10)
}
 0x385   : > { %817 = dma.vmem_to_hbm [thread:$0]  (%p1421_p2), %s1348_s15, 256, %s1346_s13, %s609_s24  }
 0x386 PF: > { %s1422_s14 = sld [smem:[#allocation13_spill]]  ;;  %s1423_s9 = sld [smem:[#allocation14_spill]] }
 0x387   : > { %p1425_p5 = scmp.ge.s32.totalorder %s1073_s29, 2 }
 0x38c   : > { %s638_s11 = sand.u32 1, %s1422_s14   ;;  %p1424_p3 = scmp.ne.s32.totalorder %s1423_s9, 0 }
 0x38d   : > { %s639_s27 = scalar_lea.sflag [#allocation5], %s638_s11 }
 0x38e   : > { %p831_p9 = pnand %p1425_p5, %p1424_p3 }
 0x390   : > { %1048 = dma.done.wait (!%p831_p9), %s639_s27, 256  }
 0x391   : > { %1050 = vsyncadd (!%p831_p9), %s639_s27, 4294967040  ;;  %s24_s29 = sadd.s32 1, %s1073_s29   ;;  %s1426_s24 = smov %s1057_s25 }
 0x392   : > { %p21_p11 = scmp.ge.s32.totalorder %s24_s29, 4   ;;  %s1427_s25 = smov %s1061_s26 }
 0x393   : > { %s1428_s26 = smov %s1268_s8  ;;  %s1429_s27 = smov %s1069_s28 }
 0x394   : > { %s1430_s28 = smov %s1432_s20  ;;  %23 = sbr.rel (!%p21_p11) target bundleno = 7 (0x7), region = 111 }
 0x39b   :  { %644 = vsyncpa [#allocation4], 1 }
 0x39c   :  { %646 = vsyncpa [#allocation4 + $0x1], 1 }
 0x39d   :  { %647 = vsyncpa [#allocation7], 1 }
 0x39e   :  { %648 = vsyncpa [#allocation5], 1 }
 0x39f   :  { %650 = vsyncpa [#allocation5 + $0x1], 1 }

</bundles_post_ra>
